<compile_context>
chip_gen: v6e
topology: v6e:2x2x1
jax: 0.10.0
libtpu: 0.0.40
codegen_flags: <defaults>
</compile_context>

<pallas_src>
import functools

import jax
import jax.numpy as jnp
from jax.experimental import pallas as pl
from jax.experimental.pallas import tpu as pltpu


def _round_up(x, m):
    return (x + m - 1) // m * m


# --------------------------------------------------------------------------
# Tiled fused GCN layer kernel:  act(S @ (X @ W))
# --------------------------------------------------------------------------
def _gcn_layer_kernel(s_ref, x_ref, w_ref, o_ref, acc_ref, *, compute_dtype):
    k = pl.program_id(1)

    @pl.when(k == 0)
    def _():
        acc_ref[...] = jnp.zeros_like(acc_ref)

    # Project this k-slab of X through W on the MXU, then accumulate the
    # S-tile contribution.  f32 accumulation regardless of compute dtype.
    xw = jnp.dot(x_ref[...].astype(compute_dtype),
                 w_ref[...].astype(compute_dtype),
                 preferred_element_type=jnp.float32)
    acc_ref[...] += jnp.dot(s_ref[...].astype(compute_dtype),
                            xw.astype(compute_dtype),
                            preferred_element_type=jnp.float32)

    @pl.when(k == pl.num_programs(1) - 1)
    def _():
        y = acc_ref[...]
        o_ref[...] = jnp.maximum(y, 0.2 * y).astype(o_ref.dtype)


def gcn_layer(support, x, w, *, tm=512, tk=512, compute_dtype=jnp.float32):
    """act(support @ (x @ w)) with act = max(y, 0.2*y), tiled for TPU."""
    n, d_in = x.shape
    assert support.shape == (n, n)
    assert w.shape[0] == d_in
    d_out = w.shape[1]

    # Lane-dense output width (multiple of 128); padded columns stay zero.
    n_out = _round_up(d_out, 128)
    # Clamp tiles for small graphs while keeping (8, 128) legality.
    tm = min(tm, _round_up(n, 8))
    tk = min(tk, _round_up(n, 128))
    n_rows = _round_up(n, tm)
    n_k = _round_up(n, tk)

    s_p = jnp.pad(support, ((0, n_rows - n), (0, n_k - n)))
    x_p = jnp.pad(x, ((0, n_k - n), (0, 0)))
    w_p = jnp.pad(w, ((0, 0), (0, n_out - d_out)))

    grid = (n_rows // tm, n_k // tk)

    flops = 2 * n_rows * n_k * n_out + grid[0] * 2 * n_k * d_in * n_out
    bytes_accessed = 4 * (n_rows * n_k                      # S stream
                          + grid[0] * n_k * d_in            # X re-read per row tile
                          + grid[0] * grid[1] * d_in * n_out
                          + n_rows * n_out)                 # output
    # Double-buffered tiles + resident W + accumulator, with headroom.
    vmem_est = 4 * (2 * tm * tk + 2 * tk * d_in + 2 * d_in * n_out
                    + 3 * tm * n_out) + (4 << 20)
    vmem_limit = int(min(64 << 20, max(32 << 20, vmem_est)))

    out = pl.pallas_call(
        functools.partial(_gcn_layer_kernel, compute_dtype=compute_dtype),
        out_shape=jax.ShapeDtypeStruct((n_rows, n_out), jnp.float32),
        grid=grid,
        in_specs=[
            pl.BlockSpec((tm, tk), lambda i, k: (i, k)),        # S tile
            pl.BlockSpec((tk, d_in), lambda i, k: (k, 0)),      # X k-slab
            pl.BlockSpec((d_in, n_out), lambda i, k: (0, 0)),   # W (resident)
        ],
        out_specs=pl.BlockSpec((tm, n_out), lambda i, k: (i, 0)),
        scratch_shapes=[pltpu.VMEM((tm, n_out), jnp.float32)],
        compiler_params=pltpu.CompilerParams(
            dimension_semantics=("parallel", "arbitrary"),
            vmem_limit_bytes=vmem_limit),
        cost_estimate=pl.CostEstimate(
            flops=flops, transcendentals=0, bytes_accessed=bytes_accessed),
    )(s_p, x_p, w_p)

    return out[:n, :d_out]


# --------------------------------------------------------------------------
# Forward pass (mode == 'GCN+INIT')
# --------------------------------------------------------------------------
@functools.partial(jax.jit,
                   static_argnames=("label_num", "w2v_dim", "output_dim",
                                    "tm", "tk"))
def gcn_dense_mse_2s_forward(features_att, features_all,
                             support_att, support_all,
                             w_att1, w_att2, w_all1, w_all2,
                             *, label_num, w2v_dim, output_dim,
                             tm=512, tk=512):
    # GCN+INIT residual add requires matching dims (silent mis-fold otherwise).
    assert output_dim == w2v_dim, "GCN+INIT requires output_dim == w2v_dim"

    # ---- attribute-stream input construction (mirrors the torch ops) ----
    x = jnp.swapaxes(features_att, -2, -1)   # (B, K, num_att, 1)
    x = jnp.swapaxes(x, -2, -3)              # (B, num_att, K, 1)
    x = jnp.squeeze(x, axis=-1)              # explicit axis: safe for B==1/K==1
    x = jnp.sum(x, axis=-1)                  # (B, num_att)

    # Tiny broadcast multiply: plain JAX (fuses into neighbors for free).
    att_base = features_all[label_num:, :]               # (num_att, w2v)
    att_feature = att_base[None, :, :] * x[:, :, None]   # (B, num_att, w2v)
    inputs_att = att_feature.reshape(-1, w2v_dim)

    # ---- attribute-stream GCN (two tiled Pallas layers) ----
    hidden_att = gcn_layer(support_att, inputs_att, w_att1, tm=tm, tk=tk)
    gcn_out_att = gcn_layer(support_att, hidden_att, w_att2, tm=tm, tk=tk)

    # ---- all-node-stream GCN (two tiled Pallas layers) ----
    hidden_all = gcn_layer(support_all, features_all, w_all1, tm=tm, tk=tk)
    gcn_out_all = gcn_layer(support_all, hidden_all, w_all2, tm=tm, tk=tk)

    # ---- mode == 'GCN+INIT' combination ----
    outputs_att = gcn_out_att + att_feature.reshape(-1, output_dim)
    outputs_all = gcn_out_all + features_all.reshape(-1, output_dim)
    return outputs_att, outputs_all


# --------------------------------------------------------------------------
# Pure-JAX reference for correctness checking
# --------------------------------------------------------------------------
def _reference(features_att, features_all, support_att, support_all,
               w_att1, w_att2, w_all1, w_all2, label_num, w2v_dim, output_dim):
    act = lambda y: jnp.maximum(y, 0.2 * y)
    x = jnp.swapaxes(features_att, -2, -1)
    x = jnp.swapaxes(x, -2, -3)
    x = jnp.squeeze(x, axis=-1)
    x = jnp.sum(x, axis=-1)
    att_base = features_all[label_num:, :]
    att_feature = att_base[None, :, :] * x[:, :, None]
    inputs_att = att_feature.reshape(-1, w2v_dim)
    h = act(support_att @ (inputs_att @ w_att1))
    g_att = act(support_att @ (h @ w_att2))
    h2 = act(support_all @ (features_all @ w_all1))
    g_all = act(support_all @ (h2 @ w_all2))
    return (g_att + att_feature.reshape(-1, output_dim),
            g_all + features_all.reshape(-1, output_dim))


# --------------------------------------------------------------------------
if __name__ == "__main__":
    key = jax.random.PRNGKey(0)
    ks = jax.random.split(key, 8)

    # Small but non-trivial configuration: the 'att' graph has 240 nodes so
    # the kernel runs a real (2, 2) grid (multi-tile rows + k-reduction).
    B, K, num_att = 2, 4, 120      # features_att: (B, K, 1, num_att)
    label_num = 8
    w2v_dim = 32                   # FLAGS.w2v_dim == input_dim
    hidden1 = 32                   # FLAGS.hidden1
    output_dim = 32                # FLAGS.output_dim (== w2v_dim for GCN+INIT)
    n_all = label_num + num_att    # 128 nodes in the 'all' graph
    n_att = B * num_att            # 240 nodes in the 'att' graph

    features_att = jax.random.normal(ks[0], (B, K, 1, num_att), jnp.float32)
    features_all = jax.random.normal(ks[1], (n_all, w2v_dim), jnp.float32)

    def make_support(k, n):
        a = jnp.abs(jax.random.normal(k, (n, n), jnp.float32)) + jnp.eye(n)
        return a / jnp.sum(a, axis=1, keepdims=True)

    support_all = make_support(ks[2], n_all)
    support_att = make_support(ks[3], n_att)

    def glorot(k, shape):
        lim = (6.0 / (shape[0] + shape[1])) ** 0.5
        return jax.random.uniform(k, shape, jnp.float32, -lim, lim)

    w_att1 = glorot(ks[4], (w2v_dim, hidden1))
    w_att2 = glorot(ks[5], (hidden1, output_dim))
    w_all1 = glorot(ks[6], (w2v_dim, hidden1))
    w_all2 = glorot(ks[7], (hidden1, output_dim))

    out_att, out_all = gcn_dense_mse_2s_forward(
        features_att, features_all, support_att, support_all,
        w_att1, w_att2, w_all1, w_all2,
        label_num=label_num, w2v_dim=w2v_dim, output_dim=output_dim,
        tm=128, tk=128)
    jax.block_until_ready((out_att, out_all))

    ref_att, ref_all = _reference(
        features_att, features_all, support_att, support_all,
        w_att1, w_att2, w_all1, w_all2, label_num, w2v_dim, output_dim)

    assert out_att.shape == (n_att, output_dim)
    assert out_all.shape == (n_all, output_dim)
    assert jnp.allclose(out_att, ref_att, atol=1e-4, rtol=1e-4)
    assert jnp.allclose(out_all, ref_all, atol=1e-4, rtol=1e-4)

    print("KERNEL_OK")
</pallas_src>

<mosaic_0001>
module attributes {stable_mosaic.version = 11 : i64} {
  func.func @_gcn_layer_kernel(%arg0: i32, %arg1: i32, %arg2: memref<128x128xf32, #tpu.memory_space<vmem>>, %arg3: memref<128x32xf32, #tpu.memory_space<vmem>>, %arg4: memref<32x128xf32, #tpu.memory_space<vmem>>, %arg5: memref<128x128xf32, #tpu.memory_space<vmem>>, %arg6: memref<128x128xf32, #tpu.memory_space<vmem>>) attributes {dimension_semantics = [#tpu.dimension_semantics<parallel>, #tpu.dimension_semantics<arbitrary>], iteration_bounds = array<i64: 2, 2>, scalar_prefetch = 0 : i64, scratch_operands = 1 : i64, tpu.core_type = #tpu.core_type<tc>, window_params = [{transform_indices = @transform_0, window_bounds = array<i64: 128, 128>}, {transform_indices = @transform_1, window_bounds = array<i64: 128, 32>}, {pipeline_mode = #tpu.pipeline_mode<synchronous>, transform_indices = @transform_2, window_bounds = array<i64: 32, 128>}, {transform_indices = @transform_3, window_bounds = array<i64: 128, 128>}]} {
    %c0_i32 = arith.constant 0 : i32
    %0 = arith.cmpi eq, %arg1, %c0_i32 : i32
    %1 = arith.extui %0 : i1 to i32
    %c0_i32_0 = arith.constant 0 : i32
    %2 = arith.cmpi ne, %1, %c0_i32_0 : i32
    scf.if %2 {
      %cst_12 = arith.constant 0.000000e+00 : f32
      %14 = vector.broadcast %cst_12 : f32 to vector<128x128xf32>
      %c0_13 = arith.constant 0 : index
      %c0_14 = arith.constant 0 : index
      %15 = vector.load %arg6[%c0_13, %c0_14] : memref<128x128xf32, #tpu.memory_space<vmem>>, vector<128x128xf32>
      tpu.vector_store %arg6[%c0_13, %c0_14], %14 {strides = array<i32>} : memref<128x128xf32, #tpu.memory_space<vmem>>, vector<128x128xf32>,
    } else {
    }
    %c0 = arith.constant 0 : index
    %c0_1 = arith.constant 0 : index
    %3 = vector.load %arg3[%c0, %c0_1] : memref<128x32xf32, #tpu.memory_space<vmem>>, vector<128x32xf32>
    %c0_2 = arith.constant 0 : index
    %c0_3 = arith.constant 0 : index
    %4 = vector.load %arg4[%c0_2, %c0_3] : memref<32x128xf32, #tpu.memory_space<vmem>>, vector<32x128xf32>
    %cst = arith.constant dense<0.000000e+00> : vector<128x128xf32>
    %5 = tpu.matmul %3, %4, %cst {dimension_numbers = #tpu.dot_dimension_numbers<[1], [0], [0], [1], [0, 0, 1, 1], [], []>} : vector<128x32xf32>, vector<32x128xf32>, vector<128x128xf32> -> vector<128x128xf32>
    %c0_4 = arith.constant 0 : index
    %c0_5 = arith.constant 0 : index
    %6 = vector.load %arg6[%c0_4, %c0_5] : memref<128x128xf32, #tpu.memory_space<vmem>>, vector<128x128xf32>
    %c0_6 = arith.constant 0 : index
    %c0_7 = arith.constant 0 : index
    %7 = vector.load %arg2[%c0_6, %c0_7] : memref<128x128xf32, #tpu.memory_space<vmem>>, vector<128x128xf32>
    %cst_8 = arith.constant dense<0.000000e+00> : vector<128x128xf32>
    %8 = tpu.matmul %7, %5, %cst_8 {dimension_numbers = #tpu.dot_dimension_numbers<[1], [0], [0], [1], [0, 0, 1, 1], [], []>} : vector<128x128xf32>, vector<128x128xf32>, vector<128x128xf32> -> vector<128x128xf32>
    %9 = arith.addf %6, %8 : vector<128x128xf32>
    %c0_9 = arith.constant 0 : index
    %c0_10 = arith.constant 0 : index
    %10 = vector.load %arg6[%c0_9, %c0_10] : memref<128x128xf32, #tpu.memory_space<vmem>>, vector<128x128xf32>
    tpu.vector_store %arg6[%c0_9, %c0_10], %9 {strides = array<i32>} : memref<128x128xf32, #tpu.memory_space<vmem>>, vector<128x128xf32>,
    %c1_i32 = arith.constant 1 : i32
    %11 = arith.cmpi eq, %arg1, %c1_i32 : i32
    %12 = arith.extui %11 : i1 to i32
    %c0_i32_11 = arith.constant 0 : i32
    %13 = arith.cmpi ne, %12, %c0_i32_11 : i32
    scf.if %13 {
      %c0_12 = arith.constant 0 : index
      %c0_13 = arith.constant 0 : index
      %14 = vector.load %arg6[%c0_12, %c0_13] : memref<128x128xf32, #tpu.memory_space<vmem>>, vector<128x128xf32>
      %cst_14 = arith.constant 2.000000e-01 : f32
      %15 = vector.broadcast %cst_14 : f32 to vector<128x128xf32>
      %16 = arith.mulf %15, %14 : vector<128x128xf32>
      %17 = arith.maximumf %14, %16 : vector<128x128xf32>
      %c0_15 = arith.constant 0 : index
      %c0_16 = arith.constant 0 : index
      %18 = vector.load %arg5[%c0_15, %c0_16] : memref<128x128xf32, #tpu.memory_space<vmem>>, vector<128x128xf32>
      tpu.vector_store %arg5[%c0_15, %c0_16], %17 {strides = array<i32>} : memref<128x128xf32, #tpu.memory_space<vmem>>, vector<128x128xf32>,
    } else {
    }
    return
  }
  func.func @transform_0(%arg0: i32, %arg1: i32) -> (i32, i32) {
    %c0_i32 = arith.constant 0 : i32
    return %arg0, %arg1 : i32, i32
  }
  func.func @transform_1(%arg0: i32, %arg1: i32) -> (i32, i32) {
    %c0_i32 = arith.constant 0 : i32
    %c0_i32_0 = arith.constant 0 : i32
    return %arg1, %c0_i32 : i32, i32
  }
  func.func @transform_2(%arg0: i32, %arg1: i32) -> (i32, i32) {
    %c0_i32 = arith.constant 0 : i32
    %c0_i32_0 = arith.constant 0 : i32
    %c0_i32_1 = arith.constant 0 : i32
    return %c0_i32, %c0_i32_0 : i32, i32
  }
  func.func @transform_3(%arg0: i32, %arg1: i32) -> (i32, i32) {
    %c0_i32 = arith.constant 0 : i32
    %c0_i32_0 = arith.constant 0 : i32
    return %arg0, %c0_i32 : i32, i32
  }
}

module attributes {stable_mosaic.version = 11 : i64} {
  func.func @_gcn_layer_kernel(%arg0: i32, %arg1: i32, %arg2: memref<128x128xf32, #tpu.memory_space<vmem>>, %arg3: memref<128x32xf32, #tpu.memory_space<vmem>>, %arg4: memref<32x128xf32, #tpu.memory_space<vmem>>, %arg5: memref<128x128xf32, #tpu.memory_space<vmem>>, %arg6: memref<128x128xf32, #tpu.memory_space<vmem>>) attributes {dimension_semantics = [#tpu.dimension_semantics<parallel>, #tpu.dimension_semantics<arbitrary>], iteration_bounds = array<i64: 1, 1>, scalar_prefetch = 0 : i64, scratch_operands = 1 : i64, tpu.core_type = #tpu.core_type<tc>, window_params = [{transform_indices = @transform_0, window_bounds = array<i64: 128, 128>}, {transform_indices = @transform_1, window_bounds = array<i64: 128, 32>}, {pipeline_mode = #tpu.pipeline_mode<synchronous>, transform_indices = @transform_2, window_bounds = array<i64: 32, 128>}, {transform_indices = @transform_3, window_bounds = array<i64: 128, 128>}]} {
    %c0_i32 = arith.constant 0 : i32
    %0 = arith.cmpi eq, %arg1, %c0_i32 : i32
    %1 = arith.extui %0 : i1 to i32
    %c0_i32_0 = arith.constant 0 : i32
    %2 = arith.cmpi ne, %1, %c0_i32_0 : i32
    scf.if %2 {
      %cst_13 = arith.constant 0.000000e+00 : f32
      %14 = vector.broadcast %cst_13 : f32 to vector<128x128xf32>
      %c0_14 = arith.constant 0 : index
      %c0_15 = arith.constant 0 : index
      %15 = vector.load %arg6[%c0_14, %c0_15] : memref<128x128xf32, #tpu.memory_space<vmem>>, vector<128x128xf32>
      tpu.vector_store %arg6[%c0_14, %c0_15], %14 {strides = array<i32>} : memref<128x128xf32, #tpu.memory_space<vmem>>, vector<128x128xf32>,
    } else {
    }
    %c0 = arith.constant 0 : index
    %c0_1 = arith.constant 0 : index
    %3 = vector.load %arg3[%c0, %c0_1] : memref<128x32xf32, #tpu.memory_space<vmem>>, vector<128x32xf32>
    %c0_2 = arith.constant 0 : index
    %c0_3 = arith.constant 0 : index
    %4 = vector.load %arg4[%c0_2, %c0_3] : memref<32x128xf32, #tpu.memory_space<vmem>>, vector<32x128xf32>
    %cst = arith.constant dense<0.000000e+00> : vector<128x128xf32>
    %5 = tpu.matmul %3, %4, %cst {dimension_numbers = #tpu.dot_dimension_numbers<[1], [0], [0], [1], [0, 0, 1, 1], [], []>} : vector<128x32xf32>, vector<32x128xf32>, vector<128x128xf32> -> vector<128x128xf32>
    %c0_4 = arith.constant 0 : index
    %c0_5 = arith.constant 0 : index
    %6 = vector.load %arg6[%c0_4, %c0_5] : memref<128x128xf32, #tpu.memory_space<vmem>>, vector<128x128xf32>
    %c0_6 = arith.constant 0 : index
    %c0_7 = arith.constant 0 : index
    %7 = vector.load %arg2[%c0_6, %c0_7] : memref<128x128xf32, #tpu.memory_space<vmem>>, vector<128x128xf32>
    %cst_8 = arith.constant dense<0.000000e+00> : vector<128x128xf32>
    %8 = tpu.matmul %7, %5, %cst_8 {dimension_numbers = #tpu.dot_dimension_numbers<[1], [0], [0], [1], [0, 0, 1, 1], [], []>} : vector<128x128xf32>, vector<128x128xf32>, vector<128x128xf32> -> vector<128x128xf32>
    %9 = arith.addf %6, %8 : vector<128x128xf32>
    %c0_9 = arith.constant 0 : index
    %c0_10 = arith.constant 0 : index
    %10 = vector.load %arg6[%c0_9, %c0_10] : memref<128x128xf32, #tpu.memory_space<vmem>>, vector<128x128xf32>
    tpu.vector_store %arg6[%c0_9, %c0_10], %9 {strides = array<i32>} : memref<128x128xf32, #tpu.memory_space<vmem>>, vector<128x128xf32>,
    %c0_i32_11 = arith.constant 0 : i32
    %11 = arith.cmpi eq, %arg1, %c0_i32_11 : i32
    %12 = arith.extui %11 : i1 to i32
    %c0_i32_12 = arith.constant 0 : i32
    %13 = arith.cmpi ne, %12, %c0_i32_12 : i32
    scf.if %13 {
      %c0_13 = arith.constant 0 : index
      %c0_14 = arith.constant 0 : index
      %14 = vector.load %arg6[%c0_13, %c0_14] : memref<128x128xf32, #tpu.memory_space<vmem>>, vector<128x128xf32>
      %cst_15 = arith.constant 2.000000e-01 : f32
      %15 = vector.broadcast %cst_15 : f32 to vector<128x128xf32>
      %16 = arith.mulf %15, %14 : vector<128x128xf32>
      %17 = arith.maximumf %14, %16 : vector<128x128xf32>
      %c0_16 = arith.constant 0 : index
      %c0_17 = arith.constant 0 : index
      %18 = vector.load %arg5[%c0_16, %c0_17] : memref<128x128xf32, #tpu.memory_space<vmem>>, vector<128x128xf32>
      tpu.vector_store %arg5[%c0_16, %c0_17], %17 {strides = array<i32>} : memref<128x128xf32, #tpu.memory_space<vmem>>, vector<128x128xf32>,
    } else {
    }
    return
  }
  func.func @transform_0(%arg0: i32, %arg1: i32) -> (i32, i32) {
    %c0_i32 = arith.constant 0 : i32
    return %arg0, %arg1 : i32, i32
  }
  func.func @transform_1(%arg0: i32, %arg1: i32) -> (i32, i32) {
    %c0_i32 = arith.constant 0 : i32
    %c0_i32_0 = arith.constant 0 : i32
    return %arg1, %c0_i32 : i32, i32
  }
  func.func @transform_2(%arg0: i32, %arg1: i32) -> (i32, i32) {
    %c0_i32 = arith.constant 0 : i32
    %c0_i32_0 = arith.constant 0 : i32
    %c0_i32_1 = arith.constant 0 : i32
    return %c0_i32, %c0_i32_0 : i32, i32
  }
  func.func @transform_3(%arg0: i32, %arg1: i32) -> (i32, i32) {
    %c0_i32 = arith.constant 0 : i32
    %c0_i32_0 = arith.constant 0 : i32
    return %arg0, %c0_i32 : i32, i32
  }
}

</mosaic_0001>

<bundles_post_ra>
// kernel: gcn_dense_mse_2s_forward.4
= control target key start
LH: loop header
LB: loop body
LE: loop exit
PB: predicated region body
PF: predicated region fallthrough
CT: control target
= control target key end

     0   :  { %s1247_s12 = smov 0   ;;  %s1249_s13 = smov 0   ;;  %s1465_s0 = inlined_call_operand.vmem [shape: f32[256,256], index: 0, kind: input, shape index: {}]   ;;  %s1466_s1 = inlined_call_operand.vmem [shape: f32[256,32], index: 1, kind: input, shape index: {}]   ;;  %s1467_s2 = inlined_call_operand.vmem [shape: f32[32,128], index: 2, kind: input, shape index: {}]   ;;  %s1468_s3 = inlined_call_operand.vmem [shape: f32[256,128], index: 3, kind: output, shape index: {}]  }
   0x1   :  { %s1251_s14 = smov 0   ;;  %s1253_s15 = smov 0  }
   0x2   :  { %s1255_s16 = smov 0   ;;  %s1257_s17 = smov 0  }
   0x3   :  { %s1259_s18 = smov 0  }
   0x4 LB: > { %s22_s19 = sadd.s32 1, %s1216_s16  ;;  %s25_s20 = sadd.s32 1, %s1220_s17  ;;  %s1224_s18 = sphi %s1259_s18, %s13_s18   ;;  %s1220_s17 = sphi %s1257_s17, %s1474_s17   ;;  %s1216_s16 = sphi %s1255_s16, %s1473_s16   ;;  %s1212_s15 = sphi %s1253_s15, %s1472_s15   ;;  %s1208_s14 = sphi %s1251_s14, %s1471_s14   ;;  %s1204_s13 = sphi %s1249_s13, %s1470_s13   ;;  %s1200_s12 = sphi %s1247_s12, %s1469_s12  }
   0x5   : > { %p23_p0 = scmp.ge.s32.totalorder %s22_s19, 2  ;;  %p41_p1 = scmp.ne.s32.totalorder %s1204_s13, %s1200_s12 }
   0x6   : > { %p42_p2 = scmp.eq.s32.totalorder %s1224_s18, 0  ;;  %s34_s24 = sadd.s32 1, %s1204_s13 }
   0x7   : > { %s1476_s19 = smov (%p23_p0, %s22_s19), 0  ;;  %s1478_s20 = smov (!%p23_p0, %s25_s20), %s1220_s17 }
   0x8   : > { %p43_p3 = por %p42_p2, %p41_p1  ;;  %p27_p4 = scmp.ge.s32.totalorder %s1478_s20, 2 }
   0x9   : > { %s30_s21 = ssub.s32 %s1216_s16, %s1476_s19  ;;  %p909_p6 = scmp.ge.s32.totalorder %s1224_s18, 4 }
   0xa   : > { %s1480_s20 = smov (%p27_p4, %s1478_s20), 0 }
   0xb   : > { %s29_s22 = ssub.s32 %s1220_s17, %s1480_s20  ;;  %143 = sbr.rel (%p909_p6) target bundleno = 30 (0x1e), region = 20 }
   0xc   : > { %s31_s23 = sor.u32 %s30_s21, %s29_s22 }
   0xd   : > { %p32_p5 = scmp.eq.s32.totalorder %s31_s23, 0 }
   0xf   : > { %s1298_s25 = scalar_select %p32_p5, %s1204_s13, %s34_s24  }
  0x10   : > { %146 = sbr.rel (!%p43_p3) target bundleno = 30 (0x1e), region = 24  ;;  %s148_s26 = sand.u32 (%p43_p3), 1, %s1204_s13  }
  0x11   : > { %s940_s27 = sshll.u32 (%p43_p3), %s1220_s17, 5  ;;  %s910_s28 = sshll.u32 (%p43_p3), %s148_s26, 7 }
  0x12   : > { %s153_s29 = sadd.s32 (%p43_p3), %s1216_s16, %s940_s27  ;;  %s150_s7 = scalar_lea.vmem (%p43_p3), [#allocation3], %s910_s28 }
  0x13   : > { %s913_s30 = sshll.u32 (%p43_p3), %s153_s29, 3 }
  0x14   : > { %s1307_s6 = scalar_lea.vmem (%p43_p3), %s1465_s0, %s913_s30 }
  0x15   : > { %v214_v0 = vld [vmem:[%s1307_s6] sm:$0xff]  ;;  %v216_v1 = vld [vmem:[%s1307_s6 + $0x10] sm:$0xff] }
  0x16   : > { %v218_v2 = vld [vmem:[%s1307_s6 + $0x20] sm:$0xff]  ;;  %215 = vst [vmem:[%s150_s7] sm:$0xff] %v214_v0  ;;  %217 = vst [vmem:[%s150_s7 + $0x8] sm:$0xff] %v216_v1  ;;  %v220_v3 = vld [vmem:[%s1307_s6 + $0x30] sm:$0xff] }
  0x17   : > { %219 = vst [vmem:[%s150_s7 + $0x10] sm:$0xff] %v218_v2  ;;  %v222_v4 = vld [vmem:[%s1307_s6 + $0x40] sm:$0xff]  ;;  %v224_v5 = vld [vmem:[%s1307_s6 + $0x50] sm:$0xff]  ;;  %221 = vst [vmem:[%s150_s7 + $0x18] sm:$0xff] %v220_v3 }
  0x18   : > { %223 = vst [vmem:[%s150_s7 + $0x20] sm:$0xff] %v222_v4  ;;  %225 = vst [vmem:[%s150_s7 + $0x28] sm:$0xff] %v224_v5  ;;  %v226_v6 = vld [vmem:[%s1307_s6 + $0x60] sm:$0xff]  ;;  %v228_v7 = vld [vmem:[%s1307_s6 + $0x70] sm:$0xff] }
  0x19   : > { %v230_v8 = vld [vmem:[%s1307_s6 + $0x80] sm:$0xff]  ;;  %227 = vst [vmem:[%s150_s7 + $0x30] sm:$0xff] %v226_v6  ;;  %229 = vst [vmem:[%s150_s7 + $0x38] sm:$0xff] %v228_v7  ;;  %v232_v9 = vld [vmem:[%s1307_s6 + $0x90] sm:$0xff] }
  0x1a   : > { %231 = vst [vmem:[%s150_s7 + $0x40] sm:$0xff] %v230_v8  ;;  %v234_v10 = vld [vmem:[%s1307_s6 + $0xa0] sm:$0xff]  ;;  %v236_v11 = vld [vmem:[%s1307_s6 + $0xb0] sm:$0xff]  ;;  %233 = vst [vmem:[%s150_s7 + $0x48] sm:$0xff] %v232_v9 }
  0x1b   : > { %235 = vst [vmem:[%s150_s7 + $0x50] sm:$0xff] %v234_v10  ;;  %237 = vst [vmem:[%s150_s7 + $0x58] sm:$0xff] %v236_v11  ;;  %v238_v12 = vld [vmem:[%s1307_s6 + $0xc0] sm:$0xff]  ;;  %v240_v13 = vld [vmem:[%s1307_s6 + $0xd0] sm:$0xff] }
  0x1c   : > { %v242_v14 = vld [vmem:[%s1307_s6 + $0xe0] sm:$0xff]  ;;  %239 = vst [vmem:[%s150_s7 + $0x60] sm:$0xff] %v238_v12  ;;  %241 = vst [vmem:[%s150_s7 + $0x68] sm:$0xff] %v240_v13  ;;  %v244_v15 = vld [vmem:[%s1307_s6 + $0xf0] sm:$0xff] }
  0x1d   : > { %243 = vst [vmem:[%s150_s7 + $0x70] sm:$0xff] %v242_v14  ;;  %245 = vst [vmem:[%s150_s7 + $0x78] sm:$0xff] %v244_v15 }
  0x1e PF: > { %p914_p7 = scmp.ge.s32.totalorder %s1224_s18, 1  ;;  %p259_p8 = scmp.lt.s32.totalorder %s1224_s18, 5 }
  0x20   : > { %p260_p9 = pnand %p914_p7, %p259_p8 }
  0x21   : > { %s266_s8 = sand.u32 (!%p260_p9), 1, %s1200_s12   ;;  %s916_s9 = sshll.u32 (!%p260_p9), %s1208_s14, 4 }
  0x22   : > { %263 = sbr.rel (%p260_p9) target bundleno = 547 (0x223), region = 66  ;;  %s915_s10 = sshll.u32 (!%p260_p9), %s266_s8, 7 }
  0x23   : > { %p296_p10 = scmp.lt.s32.totalorder (!%p260_p9), %s916_s9, 31  ;;  %s918_s11 = sshll.u32 (!%p260_p9), %s1212_s15, 4 }
  0x24   : > { %p302_p11 = scmp.lt.s32.totalorder (!%p260_p9), %s918_s11, 31  ;;  %s1340_s12 = scalar_lea.vmem (!%p260_p9), [#allocation3], %s915_s10 }
  0x25   : > { %p920_p12 = scmp.ne.s32.totalorder (!%p260_p9), %s1208_s14, 0 }
  0x27   : > { %s1482_s9 = smov (!%p296_p10, %s916_s9), 31  ;;  %s1484_s11 = smov (!%p302_p11, %s918_s11), 31 }
  0x28   : > { %s917_s21 = sshll.u32 %s1482_s9, 3  ;;  %s919_s26 = sshll.u32 %s1484_s11, 3 }
  0x29   : > { %s1333_s24 = scalar_lea.vmem %s1466_s1, %s917_s21  ;;  %s1338_s29 = scalar_lea.vmem %s1468_s3, %s919_s26 }
  0x2a   : > { %310 = sbr.rel (%p920_p12) target bundleno = 56 (0x38), region = 74 }
  0x2f   : > { %v1226_v16 = vmov 0.0  }
  0x30   : > { %311 = vst [vmem:[#allocation2 + $0x30] sm:$0xff] %v1226_v16  ;;  %312 = vst [vmem:[#allocation2] sm:$0xff] %v1226_v16 }
  0x31   : > { %313 = vst [vmem:[#allocation2 + $0x58] sm:$0xff] %v1226_v16  ;;  %314 = vst [vmem:[#allocation2 + $0x18] sm:$0xff] %v1226_v16 }
  0x32   : > { %315 = vst [vmem:[#allocation2 + $0x50] sm:$0xff] %v1226_v16  ;;  %316 = vst [vmem:[#allocation2 + $0x68] sm:$0xff] %v1226_v16 }
  0x33   : > { %317 = vst [vmem:[#allocation2 + $0x8] sm:$0xff] %v1226_v16  ;;  %318 = vst [vmem:[#allocation2 + $0x48] sm:$0xff] %v1226_v16 }
  0x34   : > { %319 = vst [vmem:[#allocation2 + $0x40] sm:$0xff] %v1226_v16  ;;  %320 = vst [vmem:[#allocation2 + $0x20] sm:$0xff] %v1226_v16 }
  0x35   : > { %321 = vst [vmem:[#allocation2 + $0x10] sm:$0xff] %v1226_v16  ;;  %322 = vst [vmem:[#allocation2 + $0x38] sm:$0xff] %v1226_v16 }
  0x36   : > { %323 = vst [vmem:[#allocation2 + $0x60] sm:$0xff] %v1226_v16  ;;  %324 = vst [vmem:[#allocation2 + $0x70] sm:$0xff] %v1226_v16 }
  0x37   : > { %325 = vst [vmem:[#allocation2 + $0x78] sm:$0xff] %v1226_v16  ;;  %326 = vst [vmem:[#allocation2 + $0x28] sm:$0xff] %v1226_v16 }
  0x38 PF: > { %v346_v17 = vld [vmem:[%s1467_s2 + $0x18] sm:$0xff]  ;;  %v345_v18 = vld [vmem:[%s1467_s2 + $0x10] sm:$0xff]  ;;  %vm347_vm0 = vcmask 261120   ;;  %v327_v19 = vld [vmem:[%s1333_s24] sm:$0xff]  ;;  %p937_p13 = scmp.ne.s32.totalorder %s1208_s14, 1 }
  0x39   : > { %993 = vmatprep.subr.mxu0 %v346_v17  ;;  %v344_v20 = vld [vmem:[%s1467_s2 + $0x8] sm:$0xff]  ;;  %1001 = vmatprep.mubr.msk.f32.mxu0 %vm347_vm0, %v327_v19  ;;  %v343_v21 = vld [vmem:[%s1467_s2] sm:$0xff]  ;;  %v329_v23 = vld [vmem:[%s1333_s24 + $0x10] sm:$0xff] }
  0x3a   : > { %994 = vmatpush3.msra.mxu0 %v346_v17  ;;  %v328_v22 = vld [vmem:[%s1333_s24 + $0x8] sm:$0xff]  ;;  %v330_v24 = vld [vmem:[%s1333_s24 + $0x18] sm:$0xff]  ;;  %v331_v25 = vld [vmem:[%s1333_s24 + $0x20] sm:$0xff] }
  0x3b   : > { %995 = vmatprep.subr.mxu0 %v345_v18  ;;  %v332_v26 = vld [vmem:[%s1333_s24 + $0x28] sm:$0xff]  ;;  %v333_v27 = vld [vmem:[%s1333_s24 + $0x30] sm:$0xff]  ;;  %v334_v28 = vld [vmem:[%s1333_s24 + $0x38] sm:$0xff] }
  0x3c   : > { %996 = vmatpush3.msra.mxu0 %v345_v18  ;;  %v335_v29 = vld [vmem:[%s1333_s24 + $0x40] sm:$0xff]  ;;  %v336_v30 = vld [vmem:[%s1333_s24 + $0x48] sm:$0xff]  ;;  %v337_v31 = vld [vmem:[%s1333_s24 + $0x50] sm:$0xff] }
  0x3d   : > { %997 = vmatprep.subr.mxu0 %v344_v20  ;;  %v338_v32 = vld [vmem:[%s1333_s24 + $0x58] sm:$0xff]  ;;  %v339_v33 = vld [vmem:[%s1333_s24 + $0x60] sm:$0xff]  ;;  %v340_v34 = vld [vmem:[%s1333_s24 + $0x68] sm:$0xff] }
  0x3e   : > { %998 = vmatpush3.msra.mxu0 %v344_v20  ;;  %v341_v35 = vld [vmem:[%s1333_s24 + $0x70] sm:$0xff]  ;;  %v342_v36 = vld [vmem:[%s1333_s24 + $0x78] sm:$0xff]  ;;  %v557_v38 = vld [vmem:[%s1340_s12] sm:$0xff] }
  0x3f   : > { %999 = vmatprep.subr.mxu0 %v343_v21  ;;  %v563_v37 = vld [vmem:[%s1340_s12 + $0x30] sm:$0xff]  ;;  %v564_v55 = vld [vmem:[%s1340_s12 + $0x38] sm:$0xff]  ;;  %v558_v56 = vld [vmem:[%s1340_s12 + $0x8] sm:$0xff] }
  0x40   : > { %1000 = vmatpush3.msra.mxu0 %v343_v21  ;;  %1066 = vmatprep.mubr.f32.mxu1 %v563_v37  ;;  %v565_v57 = vld [vmem:[%s1340_s12 + $0x40] sm:$0xff]  ;;  %v559_v58 = vld [vmem:[%s1340_s12 + $0x10] sm:$0xff]  ;;  %v566_v59 = vld [vmem:[%s1340_s12 + $0x48] sm:$0xff] }
  0x41   : > { %1002 = vmatmul.mubr.msk.f32.vlgmr.msra.gmra.mxu0 %vm347_vm0, %v328_v22  ;;  %v560_v60 = vld [vmem:[%s1340_s12 + $0x18] sm:$0xff]  ;;  %v567_v61 = vld [vmem:[%s1340_s12 + $0x50] sm:$0xff]  ;;  %v561_v62 = vld [vmem:[%s1340_s12 + $0x20] sm:$0xff] }
  0x42   : > { %1004 = vmatprep.mubr.msk.f32.mxu0 %vm347_vm0, %v329_v23  ;;  %v568_v63 = vld [vmem:[%s1340_s12 + $0x58] sm:$0xff]  ;;  %v562_v0 = vld [vmem:[%s1340_s12 + $0x28] sm:$0xff]  ;;  %v569_v1 = vld [vmem:[%s1340_s12 + $0x60] sm:$0xff] }
  0x43   : > { %v570_v2 = vld [vmem:[%s1340_s12 + $0x68] sm:$0xff]  ;;  %v571_v3 = vld [vmem:[%s1340_s12 + $0x70] sm:$0xff]  ;;  %v572_v4 = vld [vmem:[%s1340_s12 + $0x78] sm:$0xff] }
  0x44   : > { %v548_v5 = vld [vmem:[#allocation2 + $0x48] sm:$0xff]  ;;  %v542_v6 = vld [vmem:[#allocation2] sm:$0xff]  ;;  %v541_v10 = vld [vmem:[#allocation2 + $0x30] sm:$0xff] }
  0x45   : > { %1005 = vmatmul.mubr.msk.f32.gmra.mxu0 %vm347_vm0, %v330_v24  ;;  %v547_v8 = vld [vmem:[#allocation2 + $0x8] sm:$0xff]  ;;  %v550_v14 = vld [vmem:[#allocation2 + $0x20] sm:$0xff]  ;;  %v544_v16 = vld [vmem:[#allocation2 + $0x18] sm:$0xff] }
  0x46   : > { %1007 = vmatprep.mubr.msk.f32.mxu0 %vm347_vm0, %v331_v25  ;;  %v549_v20 = vld [vmem:[#allocation2 + $0x40] sm:$0xff]  ;;  %v543_v22 = vld [vmem:[#allocation2 + $0x58] sm:$0xff] }
  0x49   : > { %1008 = vmatmul.mubr.msk.f32.gmra.mxu0 %vm347_vm0, %v332_v26  ;;  %v552_v26 = vld [vmem:[#allocation2 + $0x38] sm:$0xff] }
  0x4a   : > { %1010 = vmatprep.mubr.msk.f32.mxu0 %vm347_vm0, %v333_v27 }
  0x4d   : > { %1011 = vmatmul.mubr.msk.f32.gmra.mxu0 %vm347_vm0, %v334_v28  ;;  %v546_v28 = vld [vmem:[#allocation2 + $0x68] sm:$0xff] }
  0x4e   : > { %1013 = vmatprep.mubr.msk.f32.mxu0 %vm347_vm0, %v335_v29 }
  0x51   : > { %1014 = vmatmul.mubr.msk.f32.gmra.mxu0 %vm347_vm0, %v336_v30 }
  0x52   : > { %1016 = vmatprep.mubr.msk.f32.mxu0 %vm347_vm0, %v337_v31 }
  0x55   : > { %1017 = vmatmul.mubr.msk.f32.gmra.mxu0 %vm347_vm0, %v338_v32  ;;  %v551_v32 = vld [vmem:[#allocation2 + $0x10] sm:$0xff] }
  0x56   : > { %1019 = vmatprep.mubr.msk.f32.mxu0 %vm347_vm0, %v339_v33 }
  0x59   : > { %1020 = vmatmul.mubr.msk.f32.gmra.mxu0 %vm347_vm0, %v340_v34  ;;  %v545_v34 = vld [vmem:[#allocation2 + $0x50] sm:$0xff] }
  0x5a   : > { %1022 = vmatprep.mubr.msk.f32.mxu0 %vm347_vm0, %v341_v35 }
  0x5d   : > { %1023 = vmatmul.mubr.msk.f32.gmra.mxu0 %vm347_vm0, %v342_v36 }
  0x5e   : > { %1057 = vmatprep.mubr.f32.mxu0 %v557_v38  ;;  %v554_v38 = vld [vmem:[#allocation2 + $0x70] sm:$0xff] }
 0x101   : > { %v1389_v39 = vpop.f32.mrf.mxu0 }
 0x103   : > { %v1391_v40 = vpop.f32.mrf.mxu0 }
 0x105   : > { %v1393_v41 = vpop.f32.mrf.mxu0 }
 0x107   : > { %v1395_v42 = vpop.f32.mrf.mxu0 }
 0x109   : > { %v1009_v43 = vpop.f32.mrf.mxu0 }
 0x10b   : > { %v482_v44 = vpop.f32.mrf.mxu0 }
 0x10d   : > { %v1012_v45 = vpop.f32.mrf.mxu0 }
 0x10f   : > { %v492_v46 = vpop.f32.mrf.mxu0 }
 0x111   : > { %v1015_v47 = vpop.f32.mrf.mxu0 }
 0x113   : > { %v502_v48 = vpop.f32.mrf.mxu0 }
 0x115   : > { %v1018_v49 = vpop.f32.mrf.mxu0 }
 0x117   : > { %v512_v50 = vpop.f32.mrf.mxu0 }
 0x119   : > { %v1021_v51 = vpop.f32.mrf.mxu0 }
 0x11b   : > { %v522_v52 = vpop.f32.mrf.mxu0 }
 0x11d   : > { %v1024_v53 = vpop.f32.mrf.mxu0 }
 0x11e   : > { %1025 = vmatprep.subr.mxu0 %v1024_v53  ;;  %1081 = vmatprep.subr.mxu1 %v1024_v53 }
 0x11f   : > { %v532_v54 = vpop.f32.mrf.mxu0  ;;  %1026 = vmatpush3.msra.mxu0 %v1024_v53  ;;  %1097 = vmatpush3.msra.mxu1 %v1024_v53 }
 0x120   : > { %1027 = vmatprep.subr.mxu0 %v532_v54  ;;  %1082 = vmatprep.subr.mxu1 %v532_v54 }
 0x121   : > { %1028 = vmatpush3.msra.mxu0 %v532_v54  ;;  %1098 = vmatpush3.msra.mxu1 %v532_v54 }
 0x122   : > { %1029 = vmatprep.subr.mxu0 %v1021_v51  ;;  %1083 = vmatprep.subr.mxu1 %v1021_v51 }
 0x123   : > { %1030 = vmatpush3.msra.mxu0 %v1021_v51  ;;  %1099 = vmatpush3.msra.mxu1 %v1021_v51 }
 0x124   : > { %1031 = vmatprep.subr.mxu0 %v522_v52  ;;  %1084 = vmatprep.subr.mxu1 %v522_v52 }
 0x125   : > { %1032 = vmatpush3.msra.mxu0 %v522_v52  ;;  %1100 = vmatpush3.msra.mxu1 %v522_v52 }
 0x126   : > { %1033 = vmatprep.subr.mxu0 %v1018_v49  ;;  %1085 = vmatprep.subr.mxu1 %v1018_v49 }
 0x127   : > { %1034 = vmatpush3.msra.mxu0 %v1018_v49  ;;  %1101 = vmatpush3.msra.mxu1 %v1018_v49  ;;  %v555_v49 = vld [vmem:[#allocation2 + $0x78] sm:$0xff] }
 0x128   : > { %1035 = vmatprep.subr.mxu0 %v512_v50  ;;  %1086 = vmatprep.subr.mxu1 %v512_v50 }
 0x129   : > { %1036 = vmatpush3.msra.mxu0 %v512_v50  ;;  %1102 = vmatpush3.msra.mxu1 %v512_v50 }
 0x12a   : > { %1037 = vmatprep.subr.mxu0 %v1015_v47  ;;  %1087 = vmatprep.subr.mxu1 %v1015_v47 }
 0x12b   : > { %1038 = vmatpush3.msra.mxu0 %v1015_v47  ;;  %1103 = vmatpush3.msra.mxu1 %v1015_v47 }
 0x12c   : > { %1039 = vmatprep.subr.mxu0 %v502_v48  ;;  %1088 = vmatprep.subr.mxu1 %v502_v48 }
 0x12d   : > { %1040 = vmatpush3.msra.mxu0 %v502_v48  ;;  %1104 = vmatpush3.msra.mxu1 %v502_v48 }
 0x12e   : > { %1041 = vmatprep.subr.mxu0 %v1012_v45  ;;  %1089 = vmatprep.subr.mxu1 %v1012_v45 }
 0x12f   : > { %1042 = vmatpush3.msra.mxu0 %v1012_v45  ;;  %1105 = vmatpush3.msra.mxu1 %v1012_v45 }
 0x130   : > { %1043 = vmatprep.subr.mxu0 %v492_v46  ;;  %1090 = vmatprep.subr.mxu1 %v492_v46 }
 0x131   : > { %1044 = vmatpush3.msra.mxu0 %v492_v46  ;;  %1106 = vmatpush3.msra.mxu1 %v492_v46  ;;  %v556_v46 = vld [vmem:[#allocation2 + $0x28] sm:$0xff] }
 0x132   : > { %1045 = vmatprep.subr.mxu0 %v1009_v43  ;;  %1091 = vmatprep.subr.mxu1 %v1009_v43 }
 0x133   : > { %1046 = vmatpush3.msra.mxu0 %v1009_v43  ;;  %1107 = vmatpush3.msra.mxu1 %v1009_v43  ;;  %v553_v43 = vld [vmem:[#allocation2 + $0x60] sm:$0xff] }
 0x134   : > { %1047 = vmatprep.subr.mxu0 %v482_v44  ;;  %1092 = vmatprep.subr.mxu1 %v482_v44 }
 0x135   : > { %1048 = vmatpush3.msra.mxu0 %v482_v44  ;;  %1108 = vmatpush3.msra.mxu1 %v482_v44 }
 0x136   : > { %1049 = vmatprep.subr.mxu0 %v1393_v41  ;;  %1093 = vmatprep.subr.mxu1 %v1393_v41 }
 0x137   : > { %1050 = vmatpush3.msra.mxu0 %v1393_v41  ;;  %1109 = vmatpush3.msra.mxu1 %v1393_v41 }
 0x138   : > { %1051 = vmatprep.subr.mxu0 %v1395_v42  ;;  %1094 = vmatprep.subr.mxu1 %v1395_v42 }
 0x139   : > { %1052 = vmatpush3.msra.mxu0 %v1395_v42  ;;  %1110 = vmatpush3.msra.mxu1 %v1395_v42 }
 0x13a   : > { %1053 = vmatprep.subr.mxu0 %v1389_v39  ;;  %1095 = vmatprep.subr.mxu1 %v1389_v39 }
 0x13b   : > { %1054 = vmatpush3.msra.mxu0 %v1389_v39  ;;  %1111 = vmatpush3.msra.mxu1 %v1389_v39 }
 0x13c   : > { %1055 = vmatprep.subr.mxu0 %v1391_v40  ;;  %1096 = vmatprep.subr.mxu1 %v1391_v40 }
 0x13d   : > { %1056 = vmatpush3.msra.mxu0 %v1391_v40  ;;  %1112 = vmatpush3.msra.mxu1 %v1391_v40 }
 0x13e   : > { %1067 = vmatmul.mubr.f32.vlgmr.msra.gmra.mxu1 %v564_v55  ;;  %1058 = vmatmul.mubr.f32.vlgmr.msra.gmra.mxu0 %v558_v56 }
 0x13f   : > { %1069 = vmatprep.mubr.f32.mxu1 %v565_v57  ;;  %1060 = vmatprep.mubr.f32.mxu0 %v559_v58 }
 0x142   : > { %1070 = vmatmul.mubr.f32.gmra.mxu1 %v566_v59  ;;  %1061 = vmatmul.mubr.f32.gmra.mxu0 %v560_v60 }
 0x143   : > { %1072 = vmatprep.mubr.f32.mxu1 %v567_v61  ;;  %1063 = vmatprep.mubr.f32.mxu0 %v561_v62 }
 0x146   : > { %1073 = vmatmul.mubr.f32.gmra.mxu1 %v568_v63  ;;  %1064 = vmatmul.mubr.f32.gmra.mxu0 %v562_v0 }
 0x147   : > { %1075 = vmatprep.mubr.f32.mxu1 %v569_v1 }
 0x14a   : > { %1076 = vmatmul.mubr.f32.gmra.mxu1 %v570_v2 }
 0x14b   : > { %1078 = vmatprep.mubr.f32.mxu1 %v571_v3 }
 0x14e   : > { %1079 = vmatmul.mubr.f32.gmra.mxu1 %v572_v4 }
 0x1fe   : > { %v1068_v7 = vpop.f32.mrf.mxu1  ;;  %v1059_v9 = vpop.f32.mrf.mxu0 }
 0x1ff   : > { %v725_v11 = vadd.f32 %v1068_v7, %v548_v5  ;;  %v719_v12 = vadd.f32 %v1059_v9, %v542_v6 }
 0x200   : > { %v669_v13 = vpop.f32.mrf.mxu1  ;;  %v639_v15 = vpop.f32.mrf.mxu0 }
 0x201   : > { %741 = vst [vmem:[#allocation2 + $0x48] sm:$0xff] %v725_v11  ;;  %v724_v17 = vadd.f32 %v669_v13, %v547_v8  ;;  %735 = vst [vmem:[#allocation2] sm:$0xff] %v719_v12  ;;  %v718_v18 = vadd.f32 %v639_v15, %v541_v10 }
 0x202   : > { %v1071_v19 = vpop.f32.mrf.mxu1  ;;  %v1062_v21 = vpop.f32.mrf.mxu0 }
 0x203   : > { %740 = vst [vmem:[#allocation2 + $0x8] sm:$0xff] %v724_v17  ;;  %v727_v23 = vadd.f32 %v1071_v19, %v550_v14  ;;  %734 = vst [vmem:[#allocation2 + $0x30] sm:$0xff] %v718_v18  ;;  %v721_v24 = vadd.f32 %v1062_v21, %v544_v16 }
 0x204   : > { %v679_v25 = vpop.f32.mrf.mxu1  ;;  %v649_v27 = vpop.f32.mrf.mxu0 }
 0x205   : > { %743 = vst [vmem:[#allocation2 + $0x20] sm:$0xff] %v727_v23  ;;  %v726_v29 = vadd.f32 %v679_v25, %v549_v20  ;;  %737 = vst [vmem:[#allocation2 + $0x18] sm:$0xff] %v721_v24  ;;  %v720_v30 = vadd.f32 %v649_v27, %v543_v22 }
 0x206   : > { %v1074_v31 = vpop.f32.mrf.mxu1  ;;  %v1065_v33 = vpop.f32.mrf.mxu0 }
 0x207   : > { %742 = vst [vmem:[#allocation2 + $0x40] sm:$0xff] %v726_v29  ;;  %v729_v35 = vadd.f32 %v1074_v31, %v552_v26  ;;  %736 = vst [vmem:[#allocation2 + $0x58] sm:$0xff] %v720_v30  ;;  %v723_v36 = vadd.f32 %v1065_v33, %v546_v28 }
 0x208   : > { %v689_v37 = vpop.f32.mrf.mxu1  ;;  %v659_v39 = vpop.f32.mrf.mxu0 }
 0x209   : > { %745 = vst [vmem:[#allocation2 + $0x38] sm:$0xff] %v729_v35  ;;  %v728_v40 = vadd.f32 %v689_v37, %v551_v32  ;;  %739 = vst [vmem:[#allocation2 + $0x68] sm:$0xff] %v723_v36  ;;  %v722_v41 = vadd.f32 %v659_v39, %v545_v34 }
 0x20a   : > { %v1077_v42 = vpop.f32.mrf.mxu1 }
 0x20b   : > { %744 = vst [vmem:[#allocation2 + $0x10] sm:$0xff] %v728_v40  ;;  %v731_v44 = vadd.f32 %v1077_v42, %v554_v38  ;;  %738 = vst [vmem:[#allocation2 + $0x50] sm:$0xff] %v722_v41 }
 0x20c   : > { %v699_v45 = vpop.f32.mrf.mxu1 }
 0x20d   : > { %747 = vst [vmem:[#allocation2 + $0x70] sm:$0xff] %v731_v44  ;;  %v730_v47 = vadd.f32 %v699_v45, %v553_v43 }
 0x20e   : > { %v1080_v48 = vpop.f32.mrf.mxu1 }
 0x20f   : > { %746 = vst [vmem:[#allocation2 + $0x60] sm:$0xff] %v730_v47  ;;  %v733_v50 = vadd.f32 %v1080_v48, %v556_v46  ;;  %753 = sbr.rel (%p937_p13) target bundleno = 547 (0x223), region = 78 }
 0x210   : > { %v709_v51 = vpop.f32.mrf.mxu1 }
 0x211   : > { %749 = vst [vmem:[#allocation2 + $0x28] sm:$0xff] %v733_v50  ;;  %v732_v52 = vadd.f32 %v709_v51, %v555_v49 }
 0x213   : > { %748 = vst [vmem:[#allocation2 + $0x78] sm:$0xff] %v732_v52 }
 0x214   : > { %v754_v53 = vld [vmem:[#allocation2 + $0x30] sm:$0xff]  ;;  %v755_v54 = vld [vmem:[#allocation2] sm:$0xff]  ;;  %v756_v55 = vld [vmem:[#allocation2 + $0x58] sm:$0xff] }
 0x215   : > { %v770_v56 = vmul.f32 0.2, %v754_v53  ;;  %v771_v57 = vmul.f32 0.2, %v755_v54  ;;  %v772_v58 = vmul.f32 0.2, %v756_v55 }
 0x216   : > { %v757_v59 = vld [vmem:[#allocation2 + $0x18] sm:$0xff]  ;;  %v758_v60 = vld [vmem:[#allocation2 + $0x50] sm:$0xff]  ;;  %v759_v61 = vld [vmem:[#allocation2 + $0x68] sm:$0xff] }
 0x217   : > { %v786_v62 = vmax.f32 %v754_v53, %v770_v56  ;;  %v787_v63 = vmax.f32 %v755_v54, %v771_v57  ;;  %v788_v0 = vmax.f32 %v756_v55, %v772_v58  ;;  %v773_v1 = vmul.f32 0.2, %v757_v59  ;;  %v760_v2 = vld [vmem:[#allocation2 + $0x8] sm:$0xff]  ;;  %v762_v4 = vld [vmem:[#allocation2 + $0x40] sm:$0xff]  ;;  %v764_v12 = vld [vmem:[#allocation2 + $0x10] sm:$0xff] }
 0x218   : > { %v761_v3 = vld [vmem:[#allocation2 + $0x48] sm:$0xff]  ;;  %v774_v5 = vmul.f32 0.2, %v758_v60  ;;  %v775_v6 = vmul.f32 0.2, %v759_v61  ;;  %v763_v11 = vld [vmem:[#allocation2 + $0x20] sm:$0xff] }
 0x219   : > { %v776_v7 = vmul.f32 0.2, %v760_v2  ;;  %802 = vst [vmem:[%s1338_s29] sm:$0xff] %v786_v62  ;;  %803 = vst [vmem:[%s1338_s29 + $0x8] sm:$0xff] %v787_v63  ;;  %v789_v8 = vmax.f32 %v757_v59, %v773_v1  ;;  %v777_v9 = vmul.f32 0.2, %v761_v3  ;;  %v765_v17 = vld [vmem:[#allocation2 + $0x38] sm:$0xff] }
 0x21a   : > { %804 = vst [vmem:[%s1338_s29 + $0x10] sm:$0xff] %v788_v0  ;;  %v778_v10 = vmul.f32 0.2, %v762_v4  ;;  %v790_v13 = vmax.f32 %v758_v60, %v774_v5  ;;  %v791_v14 = vmax.f32 %v759_v61, %v775_v6  ;;  %v779_v16 = vmul.f32 0.2, %v763_v11  ;;  %v766_v18 = vld [vmem:[#allocation2 + $0x60] sm:$0xff] }
 0x21b   : > { %v792_v15 = vmax.f32 %v760_v2, %v776_v7  ;;  %v767_v19 = vld [vmem:[#allocation2 + $0x70] sm:$0xff]  ;;  %805 = vst [vmem:[%s1338_s29 + $0x18] sm:$0xff] %v789_v8  ;;  %v793_v20 = vmax.f32 %v761_v3, %v777_v9  ;;  %v780_v22 = vmul.f32 0.2, %v764_v12  ;;  %v781_v23 = vmul.f32 0.2, %v765_v17 }
 0x21c   : > { %v794_v21 = vmax.f32 %v762_v4, %v778_v10  ;;  %v768_v24 = vld [vmem:[#allocation2 + $0x78] sm:$0xff]  ;;  %v769_v25 = vld [vmem:[#allocation2 + $0x28] sm:$0xff]  ;;  %806 = vst [vmem:[%s1338_s29 + $0x20] sm:$0xff] %v790_v13  ;;  %807 = vst [vmem:[%s1338_s29 + $0x28] sm:$0xff] %v791_v14  ;;  %v795_v26 = vmax.f32 %v763_v11, %v779_v16  ;;  %v782_v27 = vmul.f32 0.2, %v766_v18 }
 0x21d   : > { %808 = vst [vmem:[%s1338_s29 + $0x30] sm:$0xff] %v792_v15  ;;  %v783_v28 = vmul.f32 0.2, %v767_v19  ;;  %v784_v29 = vmul.f32 0.2, %v768_v24  ;;  %809 = vst [vmem:[%s1338_s29 + $0x38] sm:$0xff] %v793_v20  ;;  %v796_v30 = vmax.f32 %v764_v12, %v780_v22  ;;  %v797_v31 = vmax.f32 %v765_v17, %v781_v23 }
 0x21e   : > { %810 = vst [vmem:[%s1338_s29 + $0x40] sm:$0xff] %v794_v21  ;;  %v785_v32 = vmul.f32 0.2, %v769_v25  ;;  %811 = vst [vmem:[%s1338_s29 + $0x48] sm:$0xff] %v795_v26  ;;  %v798_v33 = vmax.f32 %v766_v18, %v782_v27 }
 0x21f   : > { %v799_v34 = vmax.f32 %v767_v19, %v783_v28  ;;  %v800_v35 = vmax.f32 %v768_v24, %v784_v29  ;;  %812 = vst [vmem:[%s1338_s29 + $0x50] sm:$0xff] %v796_v30  ;;  %813 = vst [vmem:[%s1338_s29 + $0x58] sm:$0xff] %v797_v31 }
 0x220   : > { %v801_v36 = vmax.f32 %v769_v25, %v785_v32  ;;  %814 = vst [vmem:[%s1338_s29 + $0x60] sm:$0xff] %v798_v33 }
 0x221   : > { %815 = vst [vmem:[%s1338_s29 + $0x68] sm:$0xff] %v799_v34  ;;  %816 = vst [vmem:[%s1338_s29 + $0x70] sm:$0xff] %v800_v35 }
 0x222   : > { %817 = vst [vmem:[%s1338_s29 + $0x78] sm:$0xff] %v801_v36 }
 0x223 PF: > { %s13_s18 = sadd.s32 1, %s1224_s18   ;;  %s1469_s12 = smov %s1204_s13 }
 0x224   : > { %p10_p0 = scmp.ge.s32.totalorder %s13_s18, 6   ;;  %s1470_s13 = smov %s1298_s25 }
 0x225   : > { %s1471_s14 = smov %s1216_s16  ;;  %s1472_s15 = smov %s1220_s17 }
 0x226   : > { %s1473_s16 = smov %s1476_s19  ;;  %s1474_s17 = smov %s1480_s20 }
 0x227   :  { %12 = sbr.rel (!%p10_p0) target bundleno = 4 (0x4), region = 116 }

// kernel: gcn_dense_mse_2s_forward.6
= control target key start
LH: loop header
LB: loop body
LE: loop exit
PB: predicated region body
PF: predicated region fallthrough
CT: control target
= control target key end

     0   :  { %vm54_vm0 = vcmask 261120   ;;  %s932_s2 = inlined_call_operand.vmem [shape: f32[32,128], index: 2, kind: input, shape index: {}]   ;;  %s933_s1 = inlined_call_operand.vmem [shape: f32[128,32], index: 1, kind: input, shape index: {}]   ;;  %s934_s0 = inlined_call_operand.vmem [shape: f32[128,128], index: 0, kind: input, shape index: {}]   ;;  %s935_s3 = inlined_call_operand.vmem [shape: f32[128,128], index: 3, kind: output, shape index: {}]  }
   0x1   :  { %v53_v0 = vld [vmem:[%s932_s2 + $0x18] sm:$0xff]  ;;  %v52_v1 = vld [vmem:[%s932_s2 + $0x10] sm:$0xff]  ;;  %v34_v2 = vld [vmem:[%s933_s1] sm:$0xff] }
   0x2   :  { %596 = vmatprep.subr.mxu0 %v53_v0  ;;  %v51_v3 = vld [vmem:[%s932_s2 + $0x8] sm:$0xff]  ;;  %604 = vmatprep.mubr.msk.f32.mxu0 %vm54_vm0, %v34_v2  ;;  %v50_v4 = vld [vmem:[%s932_s2] sm:$0xff]  ;;  %v36_v6 = vld [vmem:[%s933_s1 + $0x10] sm:$0xff] }
   0x3   :  { %597 = vmatpush3.msra.mxu0 %v53_v0  ;;  %v35_v5 = vld [vmem:[%s933_s1 + $0x8] sm:$0xff]  ;;  %v37_v7 = vld [vmem:[%s933_s1 + $0x18] sm:$0xff]  ;;  %v38_v8 = vld [vmem:[%s933_s1 + $0x20] sm:$0xff] }
   0x4   :  { %598 = vmatprep.subr.mxu0 %v52_v1  ;;  %v39_v9 = vld [vmem:[%s933_s1 + $0x28] sm:$0xff]  ;;  %v40_v10 = vld [vmem:[%s933_s1 + $0x30] sm:$0xff]  ;;  %v41_v11 = vld [vmem:[%s933_s1 + $0x38] sm:$0xff] }
   0x5   :  { %599 = vmatpush3.msra.mxu0 %v52_v1  ;;  %v42_v12 = vld [vmem:[%s933_s1 + $0x40] sm:$0xff]  ;;  %v43_v13 = vld [vmem:[%s933_s1 + $0x48] sm:$0xff]  ;;  %v44_v14 = vld [vmem:[%s933_s1 + $0x50] sm:$0xff] }
   0x6   :  { %600 = vmatprep.subr.mxu0 %v51_v3  ;;  %v45_v15 = vld [vmem:[%s933_s1 + $0x58] sm:$0xff]  ;;  %v46_v16 = vld [vmem:[%s933_s1 + $0x60] sm:$0xff]  ;;  %v47_v17 = vld [vmem:[%s933_s1 + $0x68] sm:$0xff] }
   0x7   :  { %601 = vmatpush3.msra.mxu0 %v51_v3  ;;  %v48_v18 = vld [vmem:[%s933_s1 + $0x70] sm:$0xff]  ;;  %v49_v19 = vld [vmem:[%s933_s1 + $0x78] sm:$0xff]  ;;  %v264_v21 = vld [vmem:[%s934_s0] sm:$0xff] }
   0x8   :  { %602 = vmatprep.subr.mxu0 %v50_v4  ;;  %v270_v20 = vld [vmem:[%s934_s0 + $0x30] sm:$0xff]  ;;  %v271_v38 = vld [vmem:[%s934_s0 + $0x38] sm:$0xff]  ;;  %v265_v39 = vld [vmem:[%s934_s0 + $0x8] sm:$0xff] }
   0x9   :  { %603 = vmatpush3.msra.mxu0 %v50_v4  ;;  %669 = vmatprep.mubr.f32.mxu1 %v270_v20  ;;  %v272_v40 = vld [vmem:[%s934_s0 + $0x40] sm:$0xff]  ;;  %v266_v41 = vld [vmem:[%s934_s0 + $0x10] sm:$0xff]  ;;  %v273_v42 = vld [vmem:[%s934_s0 + $0x48] sm:$0xff] }
   0xa   :  { %605 = vmatmul.mubr.msk.f32.vlgmr.msra.gmra.mxu0 %vm54_vm0, %v35_v5  ;;  %v267_v43 = vld [vmem:[%s934_s0 + $0x18] sm:$0xff]  ;;  %v274_v44 = vld [vmem:[%s934_s0 + $0x50] sm:$0xff]  ;;  %v268_v45 = vld [vmem:[%s934_s0 + $0x20] sm:$0xff] }
   0xb   :  { %607 = vmatprep.mubr.msk.f32.mxu0 %vm54_vm0, %v36_v6  ;;  %v275_v46 = vld [vmem:[%s934_s0 + $0x58] sm:$0xff]  ;;  %v269_v47 = vld [vmem:[%s934_s0 + $0x28] sm:$0xff]  ;;  %v276_v48 = vld [vmem:[%s934_s0 + $0x60] sm:$0xff] }
   0xc   :  { %v277_v49 = vld [vmem:[%s934_s0 + $0x68] sm:$0xff]  ;;  %v278_v50 = vld [vmem:[%s934_s0 + $0x70] sm:$0xff]  ;;  %v279_v51 = vld [vmem:[%s934_s0 + $0x78] sm:$0xff] }
   0xe   :  { %608 = vmatmul.mubr.msk.f32.gmra.mxu0 %vm54_vm0, %v37_v7 }
   0xf   :  { %610 = vmatprep.mubr.msk.f32.mxu0 %vm54_vm0, %v38_v8 }
  0x12   :  { %611 = vmatmul.mubr.msk.f32.gmra.mxu0 %vm54_vm0, %v39_v9 }
  0x13   :  { %613 = vmatprep.mubr.msk.f32.mxu0 %vm54_vm0, %v40_v10 }
  0x16   :  { %614 = vmatmul.mubr.msk.f32.gmra.mxu0 %vm54_vm0, %v41_v11 }
  0x17   :  { %616 = vmatprep.mubr.msk.f32.mxu0 %vm54_vm0, %v42_v12 }
  0x1a   :  { %617 = vmatmul.mubr.msk.f32.gmra.mxu0 %vm54_vm0, %v43_v13 }
  0x1b   :  { %619 = vmatprep.mubr.msk.f32.mxu0 %vm54_vm0, %v44_v14 }
  0x1e   :  { %620 = vmatmul.mubr.msk.f32.gmra.mxu0 %vm54_vm0, %v45_v15 }
  0x1f   :  { %622 = vmatprep.mubr.msk.f32.mxu0 %vm54_vm0, %v46_v16 }
  0x22   :  { %623 = vmatmul.mubr.msk.f32.gmra.mxu0 %vm54_vm0, %v47_v17 }
  0x23   :  { %625 = vmatprep.mubr.msk.f32.mxu0 %vm54_vm0, %v48_v18 }
  0x26   :  { %626 = vmatmul.mubr.msk.f32.gmra.mxu0 %vm54_vm0, %v49_v19 }
  0x27   :  { %660 = vmatprep.mubr.f32.mxu0 %v264_v21 }
  0xca   :  { %v818_v22 = vpop.f32.mrf.mxu0 }
  0xcc   :  { %v820_v23 = vpop.f32.mrf.mxu0 }
  0xce   :  { %v822_v24 = vpop.f32.mrf.mxu0 }
  0xd0   :  { %v824_v25 = vpop.f32.mrf.mxu0 }
  0xd2   :  { %v612_v26 = vpop.f32.mrf.mxu0 }
  0xd4   :  { %v189_v27 = vpop.f32.mrf.mxu0 }
  0xd6   :  { %v615_v28 = vpop.f32.mrf.mxu0 }
  0xd8   :  { %v199_v29 = vpop.f32.mrf.mxu0 }
  0xda   :  { %v618_v30 = vpop.f32.mrf.mxu0 }
  0xdc   :  { %v209_v31 = vpop.f32.mrf.mxu0 }
  0xde   :  { %v621_v32 = vpop.f32.mrf.mxu0 }
  0xe0   :  { %v219_v33 = vpop.f32.mrf.mxu0 }
  0xe2   :  { %v624_v34 = vpop.f32.mrf.mxu0 }
  0xe4   :  { %v229_v35 = vpop.f32.mrf.mxu0 }
  0xe6   :  { %v627_v36 = vpop.f32.mrf.mxu0 }
  0xe7   :  { %628 = vmatprep.subr.mxu0 %v627_v36  ;;  %684 = vmatprep.subr.mxu1 %v627_v36 }
  0xe8   :  { %v239_v37 = vpop.f32.mrf.mxu0  ;;  %629 = vmatpush3.msra.mxu0 %v627_v36  ;;  %700 = vmatpush3.msra.mxu1 %v627_v36 }
  0xe9   :  { %630 = vmatprep.subr.mxu0 %v239_v37  ;;  %685 = vmatprep.subr.mxu1 %v239_v37 }
  0xea   :  { %631 = vmatpush3.msra.mxu0 %v239_v37  ;;  %701 = vmatpush3.msra.mxu1 %v239_v37 }
  0xeb   :  { %632 = vmatprep.subr.mxu0 %v624_v34  ;;  %686 = vmatprep.subr.mxu1 %v624_v34 }
  0xec   :  { %633 = vmatpush3.msra.mxu0 %v624_v34  ;;  %702 = vmatpush3.msra.mxu1 %v624_v34 }
  0xed   :  { %634 = vmatprep.subr.mxu0 %v229_v35  ;;  %687 = vmatprep.subr.mxu1 %v229_v35 }
  0xee   :  { %635 = vmatpush3.msra.mxu0 %v229_v35  ;;  %703 = vmatpush3.msra.mxu1 %v229_v35 }
  0xef   :  { %636 = vmatprep.subr.mxu0 %v621_v32  ;;  %688 = vmatprep.subr.mxu1 %v621_v32 }
  0xf0   :  { %637 = vmatpush3.msra.mxu0 %v621_v32  ;;  %704 = vmatpush3.msra.mxu1 %v621_v32 }
  0xf1   :  { %638 = vmatprep.subr.mxu0 %v219_v33  ;;  %689 = vmatprep.subr.mxu1 %v219_v33 }
  0xf2   :  { %639 = vmatpush3.msra.mxu0 %v219_v33  ;;  %705 = vmatpush3.msra.mxu1 %v219_v33 }
  0xf3   :  { %640 = vmatprep.subr.mxu0 %v618_v30  ;;  %690 = vmatprep.subr.mxu1 %v618_v30 }
  0xf4   :  { %641 = vmatpush3.msra.mxu0 %v618_v30  ;;  %706 = vmatpush3.msra.mxu1 %v618_v30 }
  0xf5   :  { %642 = vmatprep.subr.mxu0 %v209_v31  ;;  %691 = vmatprep.subr.mxu1 %v209_v31 }
  0xf6   :  { %643 = vmatpush3.msra.mxu0 %v209_v31  ;;  %707 = vmatpush3.msra.mxu1 %v209_v31 }
  0xf7   :  { %644 = vmatprep.subr.mxu0 %v615_v28  ;;  %692 = vmatprep.subr.mxu1 %v615_v28 }
  0xf8   :  { %645 = vmatpush3.msra.mxu0 %v615_v28  ;;  %708 = vmatpush3.msra.mxu1 %v615_v28 }
  0xf9   :  { %646 = vmatprep.subr.mxu0 %v199_v29  ;;  %693 = vmatprep.subr.mxu1 %v199_v29 }
  0xfa   :  { %647 = vmatpush3.msra.mxu0 %v199_v29  ;;  %709 = vmatpush3.msra.mxu1 %v199_v29 }
  0xfb   :  { %648 = vmatprep.subr.mxu0 %v612_v26  ;;  %694 = vmatprep.subr.mxu1 %v612_v26 }
  0xfc   :  { %649 = vmatpush3.msra.mxu0 %v612_v26  ;;  %710 = vmatpush3.msra.mxu1 %v612_v26 }
  0xfd   :  { %650 = vmatprep.subr.mxu0 %v189_v27  ;;  %695 = vmatprep.subr.mxu1 %v189_v27 }
  0xfe   :  { %651 = vmatpush3.msra.mxu0 %v189_v27  ;;  %711 = vmatpush3.msra.mxu1 %v189_v27 }
  0xff   :  { %652 = vmatprep.subr.mxu0 %v822_v24  ;;  %696 = vmatprep.subr.mxu1 %v822_v24 }
 0x100   :  { %653 = vmatpush3.msra.mxu0 %v822_v24  ;;  %712 = vmatpush3.msra.mxu1 %v822_v24 }
 0x101   :  { %654 = vmatprep.subr.mxu0 %v824_v25  ;;  %697 = vmatprep.subr.mxu1 %v824_v25 }
 0x102   :  { %655 = vmatpush3.msra.mxu0 %v824_v25  ;;  %713 = vmatpush3.msra.mxu1 %v824_v25 }
 0x103   :  { %656 = vmatprep.subr.mxu0 %v818_v22  ;;  %698 = vmatprep.subr.mxu1 %v818_v22 }
 0x104   :  { %657 = vmatpush3.msra.mxu0 %v818_v22  ;;  %714 = vmatpush3.msra.mxu1 %v818_v22 }
 0x105   :  { %658 = vmatprep.subr.mxu0 %v820_v23  ;;  %699 = vmatprep.subr.mxu1 %v820_v23 }
 0x106   :  { %659 = vmatpush3.msra.mxu0 %v820_v23  ;;  %715 = vmatpush3.msra.mxu1 %v820_v23 }
 0x107   :  { %670 = vmatmul.mubr.f32.vlgmr.msra.gmra.mxu1 %v271_v38  ;;  %661 = vmatmul.mubr.f32.vlgmr.msra.gmra.mxu0 %v265_v39 }
 0x108   :  { %672 = vmatprep.mubr.f32.mxu1 %v272_v40  ;;  %663 = vmatprep.mubr.f32.mxu0 %v266_v41 }
 0x10b   :  { %673 = vmatmul.mubr.f32.gmra.mxu1 %v273_v42  ;;  %664 = vmatmul.mubr.f32.gmra.mxu0 %v267_v43 }
 0x10c   :  { %675 = vmatprep.mubr.f32.mxu1 %v274_v44  ;;  %666 = vmatprep.mubr.f32.mxu0 %v268_v45 }
 0x10f   :  { %676 = vmatmul.mubr.f32.gmra.mxu1 %v275_v46  ;;  %667 = vmatmul.mubr.f32.gmra.mxu0 %v269_v47 }
 0x110   :  { %678 = vmatprep.mubr.f32.mxu1 %v276_v48 }
 0x113   :  { %679 = vmatmul.mubr.f32.gmra.mxu1 %v277_v49 }
 0x114   :  { %681 = vmatprep.mubr.f32.mxu1 %v278_v50 }
 0x117   :  { %682 = vmatmul.mubr.f32.gmra.mxu1 %v279_v51 }
 0x1c7   :  { %v671_v52 = vpop.f32.mrf.mxu1  ;;  %v662_v53 = vpop.f32.mrf.mxu0 }
 0x1c8   :  { %v483_v54 = vmul.f32 0.2, %v671_v52  ;;  %v477_v55 = vmul.f32 0.2, %v662_v53 }
 0x1c9   :  { %v376_v56 = vpop.f32.mrf.mxu1  ;;  %v346_v57 = vpop.f32.mrf.mxu0 }
 0x1ca   :  { %v499_v58 = vmax.f32 %v671_v52, %v483_v54  ;;  %v482_v59 = vmul.f32 0.2, %v376_v56  ;;  %v493_v60 = vmax.f32 %v662_v53, %v477_v55  ;;  %v476_v61 = vmul.f32 0.2, %v346_v57 }
 0x1cb   :  { %v674_v62 = vpop.f32.mrf.mxu1  ;;  %v665_v63 = vpop.f32.mrf.mxu0 }
 0x1cc   :  { %515 = vst [vmem:[%s935_s3 + $0x38] sm:$0xff] %v499_v58  ;;  %v498_v0 = vmax.f32 %v376_v56, %v482_v59  ;;  %509 = vst [vmem:[%s935_s3 + $0x8] sm:$0xff] %v493_v60  ;;  %v485_v1 = vmul.f32 0.2, %v674_v62  ;;  %v492_v2 = vmax.f32 %v346_v57, %v476_v61  ;;  %v479_v3 = vmul.f32 0.2, %v665_v63 }
 0x1cd   :  { %v386_v4 = vpop.f32.mrf.mxu1  ;;  %v356_v5 = vpop.f32.mrf.mxu0 }
 0x1ce   :  { %514 = vst [vmem:[%s935_s3 + $0x30] sm:$0xff] %v498_v0  ;;  %v501_v6 = vmax.f32 %v674_v62, %v485_v1  ;;  %508 = vst [vmem:[%s935_s3] sm:$0xff] %v492_v2  ;;  %v484_v7 = vmul.f32 0.2, %v386_v4  ;;  %v495_v8 = vmax.f32 %v665_v63, %v479_v3  ;;  %v478_v9 = vmul.f32 0.2, %v356_v5 }
 0x1cf   :  { %v677_v10 = vpop.f32.mrf.mxu1  ;;  %v668_v11 = vpop.f32.mrf.mxu0 }
 0x1d0   :  { %517 = vst [vmem:[%s935_s3 + $0x48] sm:$0xff] %v501_v6  ;;  %v500_v12 = vmax.f32 %v386_v4, %v484_v7  ;;  %511 = vst [vmem:[%s935_s3 + $0x18] sm:$0xff] %v495_v8  ;;  %v487_v13 = vmul.f32 0.2, %v677_v10  ;;  %v494_v14 = vmax.f32 %v356_v5, %v478_v9  ;;  %v481_v15 = vmul.f32 0.2, %v668_v11 }
 0x1d1   :  { %v396_v16 = vpop.f32.mrf.mxu1  ;;  %v366_v17 = vpop.f32.mrf.mxu0 }
 0x1d2   :  { %516 = vst [vmem:[%s935_s3 + $0x40] sm:$0xff] %v500_v12  ;;  %v503_v18 = vmax.f32 %v677_v10, %v487_v13  ;;  %510 = vst [vmem:[%s935_s3 + $0x10] sm:$0xff] %v494_v14  ;;  %v486_v19 = vmul.f32 0.2, %v396_v16  ;;  %v497_v20 = vmax.f32 %v668_v11, %v481_v15  ;;  %v480_v21 = vmul.f32 0.2, %v366_v17 }
 0x1d3   :  { %v680_v22 = vpop.f32.mrf.mxu1 }
 0x1d4   :  { %519 = vst [vmem:[%s935_s3 + $0x58] sm:$0xff] %v503_v18  ;;  %v502_v23 = vmax.f32 %v396_v16, %v486_v19  ;;  %513 = vst [vmem:[%s935_s3 + $0x28] sm:$0xff] %v497_v20  ;;  %v489_v24 = vmul.f32 0.2, %v680_v22  ;;  %v496_v25 = vmax.f32 %v366_v17, %v480_v21 }
 0x1d5   :  { %v406_v26 = vpop.f32.mrf.mxu1 }
 0x1d6   :  { %518 = vst [vmem:[%s935_s3 + $0x50] sm:$0xff] %v502_v23  ;;  %v505_v27 = vmax.f32 %v680_v22, %v489_v24  ;;  %512 = vst [vmem:[%s935_s3 + $0x20] sm:$0xff] %v496_v25  ;;  %v488_v28 = vmul.f32 0.2, %v406_v26 }
 0x1d7   :  { %v683_v29 = vpop.f32.mrf.mxu1 }
 0x1d8   :  { %521 = vst [vmem:[%s935_s3 + $0x68] sm:$0xff] %v505_v27  ;;  %v504_v30 = vmax.f32 %v406_v26, %v488_v28  ;;  %v491_v31 = vmul.f32 0.2, %v683_v29 }
 0x1d9   :  { %v416_v32 = vpop.f32.mrf.mxu1 }
 0x1da   :  { %520 = vst [vmem:[%s935_s3 + $0x60] sm:$0xff] %v504_v30  ;;  %v507_v33 = vmax.f32 %v683_v29, %v491_v31  ;;  %v490_v34 = vmul.f32 0.2, %v416_v32 }
 0x1dc   :  { %523 = vst [vmem:[%s935_s3 + $0x78] sm:$0xff] %v507_v33  ;;  %v506_v35 = vmax.f32 %v416_v32, %v490_v34 }
 0x1de   :  { %522 = vst [vmem:[%s935_s3 + $0x70] sm:$0xff] %v506_v35 }

</bundles_post_ra>
